<compile_context>
chip_gen: v5e
topology: v5e:2x2
jax: 0.10.0
libtpu: 0.0.40
codegen_flags: <defaults>
</compile_context>

<pallas_src>
import jax
import jax.numpy as jnp
from jax.experimental import pallas as pl
from jax.experimental.pallas import tpu as pltpu


def _identity_kernel(x_ref, o_ref):
    # Elementwise copy of the current VMEM tile.
    o_ref[...] = x_ref[...]


# Candidate lane-dense widths for the flattened slab (widest first).
_LANE_WIDTHS = (8192, 4096, 2048, 1024, 512, 256, 128)
# Target VMEM bytes per tile buffer (x2 double-buffering x in/out = ~16 MiB,
# which fits every generation's scoped VMEM once the limit is raised).
_TARGET_TILE_BYTES = 4 << 20


def identity(x: jax.Array) -> jax.Array:
    """Forward pass of Identity: returns x unchanged (same shape/dtype)."""
    orig_shape = x.shape
    dtype = x.dtype
    total = x.size

    if total == 0:
        return x

    itemsize = x.dtype.itemsize
    # Sub-32-bit dtypes pack along sublanes: f32 -> 8, bf16 -> 16, int8/fp8 -> 32.
    sublane = max(8, 32 // itemsize)

    flat = jnp.ravel(x)  # metadata-only reshape, no HBM traffic

    # Pick the widest lane-dense last dim that divides the element count.
    cols = None
    for c in _LANE_WIDTHS:
        if total % c == 0:
            cols = c
            break

    if cols is None:
        # Ragged total (not a multiple of 128): copy the whole flat array as a
        # single full-extent block (always a legal block shape).
        # TODO(synk): tile ragged totals with a masked pltpu.store for very large inputs.
        out = pl.pallas_call(
            _identity_kernel,
            out_shape=jax.ShapeDtypeStruct(flat.shape, dtype),
            input_output_aliases={0: 0},
        )(flat)
        return out.reshape(orig_shape)

    rows = total // cols
    slab = flat.reshape(rows, cols)  # metadata-only reshape

    # Tile rows so each tile is ~_TARGET_TILE_BYTES, rounded to the dtype's
    # sublane multiple. A cdiv grid handles the partial last block (no padding,
    # no divisor search).
    tile_rows = max(1, _TARGET_TILE_BYTES // (cols * itemsize))
    tile_rows = max(sublane, (tile_rows // sublane) * sublane)
    if tile_rows >= rows:
        tile_rows = rows  # block == full dim is always a legal block shape
    grid = (pl.cdiv(rows, tile_rows),)

    out = pl.pallas_call(
        _identity_kernel,
        out_shape=jax.ShapeDtypeStruct((rows, cols), dtype),
        grid_spec=pltpu.PrefetchScalarGridSpec(
            num_scalar_prefetch=0,
            grid=grid,
            in_specs=[pl.BlockSpec((tile_rows, cols), lambda i: (i, 0))],
            out_specs=pl.BlockSpec((tile_rows, cols), lambda i: (i, 0)),
        ),
        input_output_aliases={0: 0},
        compiler_params=pltpu.CompilerParams(
            dimension_semantics=("parallel",),
            vmem_limit_bytes=48 << 20,  # safe on v7x's 64 MiB, ample on v5e/v6e
        ),
    )(slab)

    return out.reshape(orig_shape)  # metadata-only reshape


if __name__ == "__main__":
    key = jax.random.PRNGKey(0)
    x = jax.random.normal(key, (2, 4, 16, 16), dtype=jnp.float32)

    y = identity(x)
    jax.block_until_ready(y)

    assert y.shape == x.shape and y.dtype == x.dtype
    assert bool(jnp.all(y == x))
    print("KERNEL_OK")
</pallas_src>

<mosaic_0001>
module attributes {stable_mosaic.version = 11 : i64} {
  func.func @_identity_kernel(%arg0: i32, %arg1: memref<1x2048xf32, #tpu.memory_space<vmem>>, %arg2: memref<1x2048xf32, #tpu.memory_space<vmem>>) attributes {dimension_semantics = [#tpu.dimension_semantics<parallel>], iteration_bounds = array<i64: 1>, scalar_prefetch = 0 : i64, scratch_operands = 0 : i64, tpu.core_type = #tpu.core_type<tc>, window_params = [{transform_indices = @transform_0, window_bounds = array<i64: 1, 2048>}, {transform_indices = @transform_1, window_bounds = array<i64: 1, 2048>}]} {
    %c0 = arith.constant 0 : index
    %c0_0 = arith.constant 0 : index
    %0 = vector.load %arg1[%c0, %c0_0] : memref<1x2048xf32, #tpu.memory_space<vmem>>, vector<1x2048xf32>
    %c0_1 = arith.constant 0 : index
    %c0_2 = arith.constant 0 : index
    %1 = vector.load %arg2[%c0_1, %c0_2] : memref<1x2048xf32, #tpu.memory_space<vmem>>, vector<1x2048xf32>
    tpu.vector_store %arg2[%c0_1, %c0_2], %0 {strides = array<i32>} : memref<1x2048xf32, #tpu.memory_space<vmem>>, vector<1x2048xf32>,
    return
  }
  func.func @transform_0(%arg0: i32) -> (i32, i32) {
    %c0_i32 = arith.constant 0 : i32
    %c0_i32_0 = arith.constant 0 : i32
    return %arg0, %c0_i32 : i32, i32
  }
  func.func @transform_1(%arg0: i32) -> (i32, i32) {
    %c0_i32 = arith.constant 0 : i32
    %c0_i32_0 = arith.constant 0 : i32
    return %arg0, %c0_i32 : i32, i32
  }
}

</mosaic_0001>

<bundles_post_ra>
// kernel: tpu_custom_call.1
= control target key start
LH: loop header
LB: loop body
LE: loop exit
PB: predicated region body
PF: predicated region fallthrough
CT: control target
= control target key end

     0   :  { %6 = vsyncpa [#allocation3], 0  ;;  %s116_s0 = inlined_call_operand.hbm [shape: f32[1,2048], index: 0, kind: input, shape index: {}, may-alias: {0,1}]   ;;  %s117_s1 = inlined_call_operand.hbm [shape: f32[1,2048], index: 1, kind: output, shape index: {}, may-alias: {0,1}]  }
   0x1   :  { %7 = vsyncpa [#allocation4], 0  ;;  %s13_s8 = sshll.u32 %s116_s0, 4  ;;  %s98_s9 = smov [#allocation2]   ;;  %s14_s8 = int_to_ptr.hbm [resolvable:$true] %s13_s8 }
   0x2   :  { %s15_s10 = sshll.u32 %s98_s9, 4  ;;  %s16_s10 = int_to_ptr.vmem [resolvable:$true] %s15_s10 }
   0x3   :  { %18 = dma.hbm_to_vmem [thread:$0]  %s14_s8, 256, %s16_s10, [#allocation3]  }
   0x4   :  { %94 = dma.done.wait [#allocation3], 256  }
   0x5   :  { %95 = vsyncadd [#allocation3], 4294967040  ;;  %s99_s11 = smov [#allocation5]   ;;  %s34_s15 = sshll.u32 %s117_s1, 4  ;;  %v23_v0 = vld [vmem:[#allocation2] sm:$0xff]  ;;  %v24_v1 = vld [vmem:[#allocation2 + $0x8] sm:$0xff]  ;;  %s35_s15 = int_to_ptr.hbm [resolvable:$true] %s34_s15 }
   0x6   :  { %s32_s12 = sshll.u32 %s99_s11, 4  ;;  %25 = vst [vmem:[#allocation5] sm:$0xff] %v23_v0  ;;  %s33_s12 = int_to_ptr.vmem [resolvable:$true] %s32_s12 }
   0x7   :  { %26 = vst [vmem:[#allocation5 + $0x8] sm:$0xff] %v24_v1 }
   0x8   :  { %37 = dma.vmem_to_hbm [thread:$0]  %s33_s12, 256, %s35_s15, [#allocation4]  }
   0x9   :  { %96 = dma.done.wait [#allocation4], 256  }
   0xa   :  { %97 = vsyncadd [#allocation4], 4294967040 }
   0xb   :  { %42 = vsyncpa [#allocation3], 1 }
   0xc   :  { %43 = vsyncpa [#allocation4], 1 }

</bundles_post_ra>
